<compile_context>
chip_gen: v7x
topology: tpu7x:2x2x1
jax: 0.10.0
libtpu: 0.0.40
codegen_flags: <defaults>
</compile_context>

<pallas_src>
import jax
import jax.numpy as jnp
from jax.experimental import pallas as pl
from jax.experimental.pallas import tpu as pltpu

_LANE = 128   # TPU lane width (last dim)
_SUBLANE = 8  # TPU sublane width (second-to-last dim)


def _round_up(x: int, m: int) -> int:
    return ((x + m - 1) // m) * m


def bottleneck_kernel(x_ref, w1_ref, b1_ref, w2_ref, b2_ref, o_ref):
    # linear1: (tile_r, Cp) @ (Cp, Lp) on the MXU, f32 accumulation; bias on VPU.
    h = jnp.dot(x_ref[...], w1_ref[...], preferred_element_type=jnp.float32)
    h = h + b1_ref[...]
    # linear2: (tile_r, Lp) @ (Lp, Cp).
    out = jnp.dot(h.astype(w2_ref.dtype), w2_ref[...],
                  preferred_element_type=jnp.float32)
    out = out + b2_ref[...]
    o_ref[...] = out.astype(o_ref.dtype)


def bottleneck(x, w1, b1, w2, b2, *, tile_rows: int = 512):
    """Bottleneck forward.

    x:  (B, conv_out)        — flattened conv output, features on lanes.
    w1: (latent, conv_out)   b1: (latent,)     (PyTorch nn.Linear layout)
    w2: (conv_out, latent)   b2: (conv_out,)
    Returns (B, conv_out).
    """
    B, conv_out = x.shape
    latent = w1.shape[0]
    dtype = x.dtype

    # ---- Lane packing: p batch rows per lane-dense packed row. -------------
    if conv_out <= _LANE and _LANE % conv_out == 0:
        p = _LANE // conv_out
    else:
        p = 1                      # already lane-dense-ish / irregular width
    Cp = p * conv_out              # packed input/output width
    Lp = p * latent                # packed hidden width

    # ---- Packed-row tiling (multiple of the sublane width). ----------------
    tile_rows = max(_SUBLANE, (tile_rows // _SUBLANE) * _SUBLANE)
    R = -(-B // p)                               # packed rows needed
    tile_r = min(tile_rows, _round_up(R, _SUBLANE))
    R_pad = _round_up(R, tile_r)
    B_pad = R_pad * p
    grid = (R_pad // tile_r,)

    # ---- One-time wrapper-side layout plumbing. -----------------------------
    if B_pad != B:
        x = jnp.pad(x, ((0, B_pad - B), (0, 0)))   # zero rows, sliced off later
    x_r = x.reshape(R_pad, Cp)                     # free row-major merge

    w1t = w1.T.astype(dtype)                       # (conv_out, latent)
    w2t = w2.T.astype(dtype)                       # (latent, conv_out)
    eye = jnp.eye(p, dtype=dtype)
    # Block-diagonal replication: p independent copies along the diagonal.
    W1 = jnp.einsum('pq,cl->pcql', eye, w1t).reshape(Cp, Lp)
    W2 = jnp.einsum('pq,lc->plqc', eye, w2t).reshape(Lp, Cp)
    B1 = jnp.tile(b1.astype(dtype), p).reshape(1, Lp)
    B2 = jnp.tile(b2.astype(dtype), p).reshape(1, Cp)

    itemsize = jnp.dtype(dtype).itemsize
    cost = pl.CostEstimate(
        flops=2 * R_pad * Cp * Lp + 2 * R_pad * Lp * Cp,
        transcendentals=0,
        bytes_accessed=itemsize * (2 * R_pad * Cp       # x in + out
                                   + 2 * Cp * Lp        # W1 + W2
                                   + Lp + Cp),          # biases
    )

    out_r = pl.pallas_call(
        bottleneck_kernel,
        out_shape=jax.ShapeDtypeStruct((R_pad, Cp), dtype),
        grid=grid,
        in_specs=[
            # Streamed, row-tiled packed activations.
            pl.BlockSpec((tile_r, Cp), lambda i: (i, 0)),
            # Weights / biases: tiny, VMEM-resident, same block every step.
            pl.BlockSpec((Cp, Lp), lambda i: (0, 0)),
            pl.BlockSpec((1, Lp), lambda i: (0, 0)),
            pl.BlockSpec((Lp, Cp), lambda i: (0, 0)),
            pl.BlockSpec((1, Cp), lambda i: (0, 0)),
        ],
        out_specs=pl.BlockSpec((tile_r, Cp), lambda i: (i, 0)),
        compiler_params=pltpu.CompilerParams(
            dimension_semantics=("parallel",)),
        cost_estimate=cost,
    )(x_r, W1, B1, W2, B2)

    out = out_r.reshape(B_pad, conv_out)           # free row-major split
    return out[:B] if B_pad != B else out


def bottleneck_ref(x, w1, b1, w2, b2):
    h = x @ w1.T + b1
    return h @ w2.T + b2


if __name__ == "__main__":
    # Small shapes consistent with the module: conv_out_size=32, latent_size=16.
    B, conv_out_size, latent_size = 8, 32, 16

    key = jax.random.PRNGKey(0)
    k_x, k_w1, k_b1, k_w2, k_b2 = jax.random.split(key, 5)

    x = jax.random.normal(k_x, (B, conv_out_size), dtype=jnp.float32)
    # Deterministic param init (mimics nn.Linear uniform(-1/sqrt(fan_in), ...)).
    lim1 = 1.0 / (conv_out_size ** 0.5)
    lim2 = 1.0 / (latent_size ** 0.5)
    w1 = jax.random.uniform(k_w1, (latent_size, conv_out_size),
                            minval=-lim1, maxval=lim1, dtype=jnp.float32)
    b1 = jax.random.uniform(k_b1, (latent_size,),
                            minval=-lim1, maxval=lim1, dtype=jnp.float32)
    w2 = jax.random.uniform(k_w2, (conv_out_size, latent_size),
                            minval=-lim2, maxval=lim2, dtype=jnp.float32)
    b2 = jax.random.uniform(k_b2, (conv_out_size,),
                            minval=-lim2, maxval=lim2, dtype=jnp.float32)

    out = bottleneck(x, w1, b1, w2, b2)
    out = jax.block_until_ready(out)

    ref = bottleneck_ref(x, w1, b1, w2, b2)
    assert out.shape == (B, conv_out_size)
    assert jnp.allclose(out, ref, atol=1e-5, rtol=1e-5), "mismatch vs reference"

    print("KERNEL_OK")
</pallas_src>

<mosaic_0001>
module attributes {stable_mosaic.version = 11 : i64} {
  func.func @bottleneck_kernel(%arg0: i32, %arg1: memref<8x128xf32, #tpu.memory_space<vmem>>, %arg2: memref<128x64xf32, #tpu.memory_space<vmem>>, %arg3: memref<1x64xf32, #tpu.memory_space<vmem>>, %arg4: memref<64x128xf32, #tpu.memory_space<vmem>>, %arg5: memref<1x128xf32, #tpu.memory_space<vmem>>, %arg6: memref<8x128xf32, #tpu.memory_space<vmem>>) attributes {dimension_semantics = [#tpu.dimension_semantics<parallel>], iteration_bounds = array<i64: 1>, scalar_prefetch = 0 : i64, scratch_operands = 0 : i64, tpu.core_type = #tpu.core_type<tc>, window_params = [{transform_indices = @transform_0, window_bounds = array<i64: 8, 128>}, {pipeline_mode = #tpu.pipeline_mode<synchronous>, transform_indices = @transform_1, window_bounds = array<i64: 128, 64>}, {pipeline_mode = #tpu.pipeline_mode<synchronous>, transform_indices = @transform_2, window_bounds = array<i64: 1, 64>}, {pipeline_mode = #tpu.pipeline_mode<synchronous>, transform_indices = @transform_3, window_bounds = array<i64: 64, 128>}, {pipeline_mode = #tpu.pipeline_mode<synchronous>, transform_indices = @transform_4, window_bounds = array<i64: 1, 128>}, {transform_indices = @transform_5, window_bounds = array<i64: 8, 128>}]} {
    %c0 = arith.constant 0 : index
    %c0_0 = arith.constant 0 : index
    %0 = vector.load %arg1[%c0, %c0_0] : memref<8x128xf32, #tpu.memory_space<vmem>>, vector<8x128xf32>
    %c0_1 = arith.constant 0 : index
    %c0_2 = arith.constant 0 : index
    %1 = vector.load %arg2[%c0_1, %c0_2] : memref<128x64xf32, #tpu.memory_space<vmem>>, vector<128x64xf32>
    %cst = arith.constant dense<0.000000e+00> : vector<8x64xf32>
    %2 = tpu.matmul %0, %1, %cst {dimension_numbers = #tpu.dot_dimension_numbers<[1], [0], [0], [1], [0, 0, 1, 1], [], []>} : vector<8x128xf32>, vector<128x64xf32>, vector<8x64xf32> -> vector<8x64xf32>
    %c0_3 = arith.constant 0 : index
    %c0_4 = arith.constant 0 : index
    %3 = vector.load %arg3[%c0_3, %c0_4] : memref<1x64xf32, #tpu.memory_space<vmem>>, vector<1x64xf32>
    %4 = vector.broadcast %3 : vector<1x64xf32> to vector<8x64xf32>
    %5 = arith.addf %2, %4 : vector<8x64xf32>
    %c0_5 = arith.constant 0 : index
    %c0_6 = arith.constant 0 : index
    %6 = vector.load %arg4[%c0_5, %c0_6] : memref<64x128xf32, #tpu.memory_space<vmem>>, vector<64x128xf32>
    %cst_7 = arith.constant dense<0.000000e+00> : vector<8x128xf32>
    %7 = tpu.matmul %5, %6, %cst_7 {dimension_numbers = #tpu.dot_dimension_numbers<[1], [0], [0], [1], [0, 0, 1, 1], [], []>} : vector<8x64xf32>, vector<64x128xf32>, vector<8x128xf32> -> vector<8x128xf32>
    %c0_8 = arith.constant 0 : index
    %c0_9 = arith.constant 0 : index
    %8 = vector.load %arg5[%c0_8, %c0_9] : memref<1x128xf32, #tpu.memory_space<vmem>>, vector<1x128xf32>
    %9 = vector.broadcast %8 : vector<1x128xf32> to vector<8x128xf32>
    %10 = arith.addf %7, %9 : vector<8x128xf32>
    %c0_10 = arith.constant 0 : index
    %c0_11 = arith.constant 0 : index
    %11 = vector.load %arg6[%c0_10, %c0_11] : memref<8x128xf32, #tpu.memory_space<vmem>>, vector<8x128xf32>
    tpu.vector_store %arg6[%c0_10, %c0_11], %10 {strides = array<i32>} : memref<8x128xf32, #tpu.memory_space<vmem>>, vector<8x128xf32>,
    return
  }
  func.func @transform_0(%arg0: i32) -> (i32, i32) {
    %c0_i32 = arith.constant 0 : i32
    %c0_i32_0 = arith.constant 0 : i32
    return %arg0, %c0_i32 : i32, i32
  }
  func.func @transform_1(%arg0: i32) -> (i32, i32) {
    %c0_i32 = arith.constant 0 : i32
    %c0_i32_0 = arith.constant 0 : i32
    %c0_i32_1 = arith.constant 0 : i32
    return %c0_i32, %c0_i32_0 : i32, i32
  }
  func.func @transform_2(%arg0: i32) -> (i32, i32) {
    %c0_i32 = arith.constant 0 : i32
    %c0_i32_0 = arith.constant 0 : i32
    %c0_i32_1 = arith.constant 0 : i32
    return %c0_i32, %c0_i32_0 : i32, i32
  }
  func.func @transform_3(%arg0: i32) -> (i32, i32) {
    %c0_i32 = arith.constant 0 : i32
    %c0_i32_0 = arith.constant 0 : i32
    %c0_i32_1 = arith.constant 0 : i32
    return %c0_i32, %c0_i32_0 : i32, i32
  }
  func.func @transform_4(%arg0: i32) -> (i32, i32) {
    %c0_i32 = arith.constant 0 : i32
    %c0_i32_0 = arith.constant 0 : i32
    %c0_i32_1 = arith.constant 0 : i32
    return %c0_i32, %c0_i32_0 : i32, i32
  }
  func.func @transform_5(%arg0: i32) -> (i32, i32) {
    %c0_i32 = arith.constant 0 : i32
    %c0_i32_0 = arith.constant 0 : i32
    return %arg0, %c0_i32 : i32, i32
  }
}

</mosaic_0001>

<bundles_post_ra>
// kernel: tpu_custom_call.1
= control target key start
LH: loop header
LB: loop body
LE: loop exit
PB: predicated region body
PF: predicated region fallthrough
CT: control target
= control target key end

     0   :  { %v366_v3 = vmov 0.0|0.0   ;;  %vm367_vm0 = vmmov 0   ;;  %v368_v6 = vmov 0.0   ;;  %s493_s0 = inlined_call_operand.vmem [shape: f32[8,128], index: 0, kind: input, shape index: {}]   ;;  %s494_s1 = inlined_call_operand.vmem [shape: f32[128,64], index: 1, kind: input, shape index: {}]   ;;  %s495_s2 = inlined_call_operand.vmem [shape: f32[1,64], index: 2, kind: input, shape index: {}]   ;;  %s496_s3 = inlined_call_operand.vmem [shape: f32[64,128], index: 3, kind: input, shape index: {}]   ;;  %s497_s4 = inlined_call_operand.vmem [shape: f32[1,128], index: 4, kind: input, shape index: {}]   ;;  %s498_s5 = inlined_call_operand.hbm [shape: f32[8,128], index: 5, kind: output, shape index: {}]  }
   0x1   :  { %v22_v0 = vld [vmem:[%s494_s1] sm:$0xff]  ;;  %v23_v1 = vld [vmem:[%s494_s1 + $0x8] sm:$0xff]  ;;  %v24_v2 = vld [vmem:[%s494_s1 + $0x10] sm:$0xff]  ;;  %302 = vmatprep.subr.bf16.mxu0 %v366_v3  ;;  %280 = vmatprep.mubr.msk.f32.mxu0 %vm367_vm0, %v368_v6 }
   0x2   :  { %v303_v4 = vpack.c.bf16 %v23_v1, %v22_v0  ;;  %v25_v5 = vld [vmem:[%s494_s1 + $0x18] sm:$0xff]  ;;  %326 = vmatprep.subr.bf16.mxu1 %v366_v3  ;;  %299 = vmatprep.mubr.msk.f32.mxu1 %vm367_vm0, %v368_v6  ;;  %v26_v8 = vld [vmem:[%s494_s1 + $0x20] sm:$0xff]  ;;  %v27_v9 = vld [vmem:[%s494_s1 + $0x28] sm:$0xff] }
   0x3   :  { %v306_v7 = vpack.c.bf16 %v25_v5, %v24_v2  ;;  %v115_v10 = vld [vmem:[%s496_s3] sm:$0xff]  ;;  %v116_v11 = vld [vmem:[%s496_s3 + $0x8] sm:$0xff]  ;;  %v117_v12 = vld [vmem:[%s496_s3 + $0x10] sm:$0xff]  ;;  %v309_v14 = vpack.c.bf16 %v27_v9, %v26_v8 }
   0x4   :  { %304 = vmatpush3.bf16.msra.mxu0 %v303_v4  ;;  %v118_v13 = vld [vmem:[%s496_s3 + $0x18] sm:$0xff]  ;;  %v327_v15 = vpack.c.bf16 %v116_v11, %v115_v10  ;;  %v28_v16 = vld [vmem:[%s494_s1 + $0x30] sm:$0xff] }
   0x5   :  { %305 = vmatprep.subr.bf16.mxu0 %v366_v3  ;;  %v29_v17 = vld [vmem:[%s494_s1 + $0x38] sm:$0xff] }
   0x8   :  { %307 = vmatpush3.bf16.msra.mxu0 %v306_v7 }
   0x9   :  { %308 = vmatprep.subr.bf16.mxu0 %v366_v3 }
   0xa   :  { %10 = vsyncpa [#allocation3], 0  ;;  %328 = vmatpush3.bf16.msra.mxu1 %v327_v15  ;;  %v330_v18 = vpack.c.bf16 %v118_v13, %v117_v12  ;;  %v119_v19 = vld [vmem:[%s496_s3 + $0x20] sm:$0xff]  ;;  %v120_v20 = vld [vmem:[%s496_s3 + $0x28] sm:$0xff]  ;;  %v312_v21 = vpack.c.bf16 %v29_v17, %v28_v16  ;;  %vm130_vm1 = vcmask 523264   ;;  %s369_s20 = smov [#allocation2]  }
   0xb   :  { %329 = vmatprep.subr.bf16.mxu1 %v366_v3  ;;  %v30_v22 = vld [vmem:[%s494_s1 + $0x40] sm:$0xff]  ;;  %v31_v23 = vld [vmem:[%s494_s1 + $0x48] sm:$0xff]  ;;  %v333_v24 = vpack.c.bf16 %v120_v20, %v119_v19  ;;  %v32_v26 = vld [vmem:[%s494_s1 + $0x50] sm:$0xff]  ;;  %s211_s21 = sshll.u32 %s369_s20, 4  ;;  %s212_s21 = int_to_ptr.vmem [resolvable:$true] %s211_s21 }
   0xc   :  { %310 = vmatpush3.bf16.msra.mxu0 %v309_v14  ;;  %v315_v25 = vpack.c.bf16 %v31_v23, %v30_v22  ;;  %v33_v27 = vld [vmem:[%s494_s1 + $0x58] sm:$0xff]  ;;  %v34_v29 = vld [vmem:[%s494_s1 + $0x60] sm:$0xff]  ;;  %v35_v30 = vld [vmem:[%s494_s1 + $0x68] sm:$0xff]  ;;  %p347_p1 = scmp.lt.s32.totalorder %s212_s21, %s212_s21 }
   0xd   :  { %311 = vmatprep.subr.bf16.mxu0 %v366_v3  ;;  %v318_v28 = vpack.c.bf16 %v33_v27, %v32_v26  ;;  %v321_v31 = vpack.c.bf16 %v35_v30, %v34_v29  ;;  %v36_v32 = vld [vmem:[%s494_s1 + $0x70] sm:$0xff]  ;;  %v37_v33 = vld [vmem:[%s494_s1 + $0x78] sm:$0xff]  ;;  %v21_v35 = vld [vmem:[%s493_s0] sm:$0xff] }
   0xe   :  { %331 = vmatpush3.bf16.msra.mxu1 %v330_v18  ;;  %v324_v34 = vpack.c.bf16 %v37_v33, %v36_v32  ;;  %v121_v36 = vld [vmem:[%s496_s3 + $0x30] sm:$0xff]  ;;  %v122_v37 = vld [vmem:[%s496_s3 + $0x38] sm:$0xff]  ;;  %v219_v39 = vld [vmem:[%s495_s2] ss:$0 sm:$0xff]  ;;  %s342_s3 = scalar_lea.vmem %s212_s21, 128 }
   0xf   :  { %332 = vmatprep.subr.bf16.mxu1 %v366_v3  ;;  %v336_v38 = vpack.c.bf16 %v122_v37, %v121_v36  ;;  %v220_v43 = vld [vmem:[%s497_s4] ss:$0 sm:$0xff]  ;;  %p343_p0 = scmp.ne.s32.totalorder %s212_s21, %s342_s3  ;;  %p348_p2 = scmp.lt.s32.totalorder %s342_s3, %s342_s3 }
  0x10   :  { %313 = vmatpush3.bf16.msra.mxu0 %v312_v21 }
  0x11   :  { %314 = vmatprep.subr.bf16.mxu0 %v366_v3  ;;  %p349_p3 = por %p348_p2, %p347_p1 }
  0x12   :  { %334 = vmatpush3.bf16.msra.mxu1 %v333_v24 }
  0x13   :  { %335 = vmatprep.subr.bf16.mxu1 %v366_v3  ;;  %p350_p4 = pnand %p349_p3, %p343_p0 }
  0x14   :  { %316 = vmatpush3.bf16.msra.mxu0 %v315_v25 }
  0x15   :  { %317 = vmatprep.subr.bf16.mxu0 %v366_v3 }
  0x16   :  { %337 = vmatpush3.bf16.msra.mxu1 %v336_v38 }
  0x18   :  { %319 = vmatpush3.bf16.msra.mxu0 %v318_v28 }
  0x19   :  { %320 = vmatprep.subr.bf16.mxu0 %v366_v3 }
  0x1c   :  { %322 = vmatpush3.bf16.msra.mxu0 %v321_v31 }
  0x1d   :  { %323 = vmatprep.subr.bf16.mxu0 %v366_v3 }
  0x20   :  { %325 = vmatpush3.bf16.msra.mxu0 %v324_v34 }
  0x23   :  { %281 = vmatmul.mubr.f32.vlgmr.msra.gmra.mrb[0].mxu0 %v21_v35 }
  0xf6   :  { %v111_v40 = vpop.f32.mrb[0].mxu0 }
  0xf7   :  { %v112_v41 = vadd.f32 %v219_v39, %v111_v40  ;;  %v282_v42 = vpop.f32.mrb[1].mxu0 }
  0xf9   :  { %300 = vmatmul.mubr.msk.f32.vlgmr.msra.gmra.mrb[0].mxu1 %vm130_vm1, %v112_v41 }
 0x1cc   :  { %v200_v44 = vpop.f32.mrb[0].mxu1 }
 0x1cd   :  { %v201_v45 = vadd.f32 %v220_v43, %v200_v44  ;;  %v301_v46 = vpop.f32.mrb[1].mxu1 }
 0x1cf   :  { %204 = vst [vmem:[#allocation2] sm:$0xff] %v201_v45 }
 0x1d0   :  { %353 = shalt.err (!%p350_p4)
}
 0x1d1   :  { %s354_s23 = scalar_lea.hbm %s498_s5, 128 }
 0x1d2   :  { %p355_p5 = scmp.ne.s32.totalorder %s498_s5, %s354_s23  ;;  %p358_p6 = scmp.lt.u32.totalorder %s354_s23, %s498_s5 }
 0x1d4   :  { %p360_p7 = pnand %p358_p6, %p355_p5 }
 0x1d6   :  { %363 = shalt.err (!%p360_p7)
}
 0x1d7   :  { %214 = dma.vmem_to_hbm [thread:$0]  %s212_s21, 128, %s498_s5, [#allocation3]  }
 0x1d8   :  { %364 = dma.done.wait [#allocation3], 128  }
 0x1d9   :  { %365 = vsyncadd [#allocation3], 4294967168 }
 0x1da   :  { %218 = vsyncpa [#allocation3], 1 }

</bundles_post_ra>
